<compile_context>
chip_gen: v7x
topology: tpu7x:2x2x1
jax: 0.10.0
libtpu: 0.0.40
codegen_flags: <defaults>
</compile_context>

<pallas_src>
import functools

import jax
import jax.numpy as jnp
from jax.experimental import pallas as pl
from jax.experimental.pallas import tpu as pltpu


def _round_up(x, m):
    return (x + m - 1) // m * m


def _reshead_kernel(x_ref, w_ref, b_ref, o_ref, acc_ref, *, inv_hw):
    # x_ref: (TN, C, THW); w_ref: (C, NCP); b_ref: (1, NCP); o_ref: (TN, NCP)
    # acc_ref: (TN, C) f32 pooled-sum accumulator (resident across spatial steps)
    s = pl.program_id(1)

    @pl.when(s == 0)
    def _init():
        acc_ref[...] = jnp.zeros_like(acc_ref)

    # Partial sum over this spatial tile; accumulate in f32 scratch.
    acc_ref[...] += jnp.sum(x_ref[...].astype(jnp.float32), axis=-1)

    @pl.when(s == pl.num_programs(1) - 1)
    def _finalize():
        w = w_ref[...]
        pooled = acc_ref[...] * inv_hw                         # (TN, C) mean, f32
        out = jnp.dot(pooled.astype(w.dtype), w,
                      preferred_element_type=jnp.float32)      # (TN, NCP)
        out = out + b_ref[...].astype(jnp.float32)             # bias, once
        o_ref[...] = out.astype(o_ref.dtype)


def res_head_forward(x_nchw, fc_weight, fc_bias, *, x_block_bytes=4 * 1024 * 1024):
    """x_nchw: (N, C, H, W); fc_weight: (nc, C) [PyTorch layout]; fc_bias: (nc,)."""
    N, C, H, W = x_nchw.shape
    nc = fc_weight.shape[0]
    HW = H * W
    itemsize = jnp.dtype(x_nchw.dtype).itemsize

    # ---- tile sizing -------------------------------------------------------
    # Batch tile: at least 8 sublane rows for the matmul M dim, capped at 128.
    TN = min(_round_up(N, 8), 128)
    N_pad = _round_up(N, TN)

    # Spatial tile: lane-dense multiple of 128 (unless the whole HW is small),
    # sized so one x block stays within the per-block VMEM budget.
    if HW <= 128:
        THW = HW
        HW_pad = HW
    else:
        max_thw = max(128, (x_block_bytes // (TN * C * itemsize)) // 128 * 128)
        THW = min(_round_up(HW, 128), max_thw)
        HW_pad = _round_up(HW, THW)

    # Output lanes padded to a multiple of 128 (unmasked lane-dense stores).
    NCP = _round_up(nc, 128)

    # ---- wrapper-side layout / zero padding (zeros never perturb the sums) --
    x_flat = x_nchw.reshape(N, C, HW)
    if N_pad != N or HW_pad != HW:
        x_flat = jnp.pad(x_flat, ((0, N_pad - N), (0, 0), (0, HW_pad - HW)))

    w_t = jnp.zeros((C, NCP), dtype=fc_weight.dtype).at[:, :nc].set(fc_weight.T)
    b2d = jnp.zeros((1, NCP), dtype=fc_bias.dtype).at[:, :nc].set(fc_bias)

    grid = (N_pad // TN, HW_pad // THW)

    cost = pl.CostEstimate(
        flops=2 * N_pad * C * NCP + N_pad * C * HW_pad,
        transcendentals=0,
        bytes_accessed=(x_flat.size * itemsize
                        + w_t.size * jnp.dtype(w_t.dtype).itemsize
                        + b2d.size * jnp.dtype(b2d.dtype).itemsize
                        + N_pad * NCP * itemsize),
    )

    kernel = functools.partial(_reshead_kernel, inv_hw=1.0 / float(HW))

    out = pl.pallas_call(
        kernel,
        out_shape=jax.ShapeDtypeStruct((N_pad, NCP), x_nchw.dtype),
        grid_spec=pltpu.PrefetchScalarGridSpec(
            num_scalar_prefetch=0,
            grid=grid,
            in_specs=[
                pl.BlockSpec((TN, C, THW), lambda b, s: (b, 0, s)),
                pl.BlockSpec((C, NCP), lambda b, s: (0, 0)),
                pl.BlockSpec((1, NCP), lambda b, s: (0, 0)),
            ],
            out_specs=pl.BlockSpec((TN, NCP), lambda b, s: (b, 0)),
            scratch_shapes=[pltpu.VMEM((TN, C), jnp.float32)],
        ),
        compiler_params=pltpu.CompilerParams(
            dimension_semantics=("parallel", "arbitrary")),
        cost_estimate=cost,
    )(x_flat, w_t, b2d)

    # Strip batch / class padding.
    return out[:N, :nc]


if __name__ == "__main__":
    # Small shapes consistent with the module: batch=2, w_in=4, spatial=16x16, nc=8.
    N, C, H, W, NC = 2, 4, 16, 16, 8

    key = jax.random.PRNGKey(0)
    kx, kw, kb = jax.random.split(key, 3)
    x = jax.random.normal(kx, (N, C, H, W), dtype=jnp.float32)
    fc_weight = jax.random.normal(kw, (NC, C), dtype=jnp.float32) * 0.1
    fc_bias = jax.random.normal(kb, (NC,), dtype=jnp.float32) * 0.1

    out = res_head_forward(x, fc_weight, fc_bias)
    out = jax.block_until_ready(out)

    # Reference check in plain JAX (same semantics as the PyTorch forward).
    pooled_ref = jnp.mean(x.reshape(N, C, H * W), axis=-1)
    ref = pooled_ref @ fc_weight.T + fc_bias
    assert out.shape == (N, NC)
    assert jnp.allclose(out, ref, atol=1e-5, rtol=1e-5)

    print("KERNEL_OK")
</pallas_src>

<mosaic_0001>
module attributes {stable_mosaic.version = 11 : i64} {
  func.func @_reshead_kernel(%arg0: i32, %arg1: i32, %arg2: memref<8x4x256xf32, #tpu.memory_space<vmem>>, %arg3: memref<4x128xf32, #tpu.memory_space<vmem>>, %arg4: memref<1x128xf32, #tpu.memory_space<vmem>>, %arg5: memref<8x128xf32, #tpu.memory_space<vmem>>, %arg6: memref<8x4xf32, #tpu.memory_space<vmem>>) attributes {dimension_semantics = [#tpu.dimension_semantics<parallel>, #tpu.dimension_semantics<arbitrary>], iteration_bounds = array<i64: 1, 1>, scalar_prefetch = 0 : i64, scratch_operands = 1 : i64, tpu.core_type = #tpu.core_type<tc>, window_params = [{transform_indices = @transform_0, window_bounds = array<i64: 8, 4, 256>}, {pipeline_mode = #tpu.pipeline_mode<synchronous>, transform_indices = @transform_1, window_bounds = array<i64: 4, 128>}, {pipeline_mode = #tpu.pipeline_mode<synchronous>, transform_indices = @transform_2, window_bounds = array<i64: 1, 128>}, {transform_indices = @transform_3, window_bounds = array<i64: 8, 128>}]} {
    %c0_i32 = arith.constant 0 : i32
    %0 = arith.cmpi eq, %arg1, %c0_i32 : i32
    %1 = arith.extui %0 : i1 to i32
    %c0_i32_0 = arith.constant 0 : i32
    %2 = arith.cmpi ne, %1, %c0_i32_0 : i32
    scf.if %2 {
      %cst_9 = arith.constant 0.000000e+00 : f32
      %11 = vector.broadcast %cst_9 : f32 to vector<8x4xf32>
      %c0_10 = arith.constant 0 : index
      %c0_11 = arith.constant 0 : index
      %12 = vector.load %arg6[%c0_10, %c0_11] : memref<8x4xf32, #tpu.memory_space<vmem>>, vector<8x4xf32>
      tpu.vector_store %arg6[%c0_10, %c0_11], %11 {strides = array<i32>} : memref<8x4xf32, #tpu.memory_space<vmem>>, vector<8x4xf32>,
    } else {
    }
    %c0 = arith.constant 0 : index
    %c0_1 = arith.constant 0 : index
    %3 = vector.load %arg6[%c0, %c0_1] : memref<8x4xf32, #tpu.memory_space<vmem>>, vector<8x4xf32>
    %c0_2 = arith.constant 0 : index
    %c0_3 = arith.constant 0 : index
    %c0_4 = arith.constant 0 : index
    %4 = vector.load %arg2[%c0_2, %c0_3, %c0_4] : memref<8x4x256xf32, #tpu.memory_space<vmem>>, vector<8x4x256xf32>
    %cst = arith.constant dense<0.000000e+00> : vector<8x4xf32>
    %5 = vector.multi_reduction <add>, %4, %cst [2] : vector<8x4x256xf32> to vector<8x4xf32>
    %6 = arith.addf %3, %5 : vector<8x4xf32>
    %c0_5 = arith.constant 0 : index
    %c0_6 = arith.constant 0 : index
    %7 = vector.load %arg6[%c0_5, %c0_6] : memref<8x4xf32, #tpu.memory_space<vmem>>, vector<8x4xf32>
    tpu.vector_store %arg6[%c0_5, %c0_6], %6 {strides = array<i32>} : memref<8x4xf32, #tpu.memory_space<vmem>>, vector<8x4xf32>,
    %c0_i32_7 = arith.constant 0 : i32
    %8 = arith.cmpi eq, %arg1, %c0_i32_7 : i32
    %9 = arith.extui %8 : i1 to i32
    %c0_i32_8 = arith.constant 0 : i32
    %10 = arith.cmpi ne, %9, %c0_i32_8 : i32
    scf.if %10 {
      %c0_9 = arith.constant 0 : index
      %c0_10 = arith.constant 0 : index
      %11 = vector.load %arg3[%c0_9, %c0_10] : memref<4x128xf32, #tpu.memory_space<vmem>>, vector<4x128xf32>
      %c0_11 = arith.constant 0 : index
      %c0_12 = arith.constant 0 : index
      %12 = vector.load %arg6[%c0_11, %c0_12] : memref<8x4xf32, #tpu.memory_space<vmem>>, vector<8x4xf32>
      %cst_13 = arith.constant 3.906250e-03 : f32
      %13 = vector.broadcast %cst_13 : f32 to vector<8x4xf32>
      %14 = arith.mulf %12, %13 : vector<8x4xf32>
      %cst_14 = arith.constant dense<0.000000e+00> : vector<8x128xf32>
      %15 = tpu.matmul %14, %11, %cst_14 {dimension_numbers = #tpu.dot_dimension_numbers<[1], [0], [0], [1], [0, 0, 1, 1], [], []>} : vector<8x4xf32>, vector<4x128xf32>, vector<8x128xf32> -> vector<8x128xf32>
      %c0_15 = arith.constant 0 : index
      %c0_16 = arith.constant 0 : index
      %16 = vector.load %arg4[%c0_15, %c0_16] : memref<1x128xf32, #tpu.memory_space<vmem>>, vector<1x128xf32>
      %17 = vector.broadcast %16 : vector<1x128xf32> to vector<8x128xf32>
      %18 = arith.addf %15, %17 : vector<8x128xf32>
      %c0_17 = arith.constant 0 : index
      %c0_18 = arith.constant 0 : index
      %19 = vector.load %arg5[%c0_17, %c0_18] : memref<8x128xf32, #tpu.memory_space<vmem>>, vector<8x128xf32>
      tpu.vector_store %arg5[%c0_17, %c0_18], %18 {strides = array<i32>} : memref<8x128xf32, #tpu.memory_space<vmem>>, vector<8x128xf32>,
    } else {
    }
    return
  }
  func.func @transform_0(%arg0: i32, %arg1: i32) -> (i32, i32, i32) {
    %c0_i32 = arith.constant 0 : i32
    %c0_i32_0 = arith.constant 0 : i32
    return %arg0, %c0_i32, %arg1 : i32, i32, i32
  }
  func.func @transform_1(%arg0: i32, %arg1: i32) -> (i32, i32) {
    %c0_i32 = arith.constant 0 : i32
    %c0_i32_0 = arith.constant 0 : i32
    %c0_i32_1 = arith.constant 0 : i32
    return %c0_i32, %c0_i32_0 : i32, i32
  }
  func.func @transform_2(%arg0: i32, %arg1: i32) -> (i32, i32) {
    %c0_i32 = arith.constant 0 : i32
    %c0_i32_0 = arith.constant 0 : i32
    %c0_i32_1 = arith.constant 0 : i32
    return %c0_i32, %c0_i32_0 : i32, i32
  }
  func.func @transform_3(%arg0: i32, %arg1: i32) -> (i32, i32) {
    %c0_i32 = arith.constant 0 : i32
    %c0_i32_0 = arith.constant 0 : i32
    return %arg0, %c0_i32 : i32, i32
  }
}

</mosaic_0001>

<bundles_post_ra>
// kernel: tpu_custom_call.1
= control target key start
LH: loop header
LB: loop body
LE: loop exit
PB: predicated region body
PF: predicated region fallthrough
CT: control target
= control target key end

     0   :  { %8 = vsyncpa [#allocation4], 0  ;;  %s470_s0 = inlined_call_operand.hbm [shape: f32[8,4,256], index: 0, kind: input, shape index: {}]   ;;  %s471_s1 = inlined_call_operand.hbm [shape: f32[4,128], index: 1, kind: input, shape index: {}]   ;;  %s472_s2 = inlined_call_operand.vmem [shape: f32[1,128], index: 2, kind: input, shape index: {}]   ;;  %s473_s3 = inlined_call_operand.hbm [shape: f32[8,128], index: 3, kind: output, shape index: {}]  }
   0x1   :  { %9 = vsyncpa [#allocation7], 0 }
   0x2   :  { %10 = vsyncpa [#allocation5], 0  ;;  %s384_s12 = smov [#allocation3]   ;;  %s312_s16 = scalar_lea.hbm %s470_s0, 1024 }
   0x3   :  { %s16_s13 = sshll.u32 %s384_s12, 4  ;;  %p313_p0 = scmp.ne.s32.totalorder %s470_s0, %s312_s16  ;;  %s17_s13 = int_to_ptr.vmem [resolvable:$true] %s16_s13 }
   0x4   :  { %p316_p1 = scmp.lt.u32.totalorder %s312_s16, %s470_s0 }
   0x6   :  { %p318_p2 = pnand %p316_p1, %p313_p0 }
   0x8   :  { %321 = shalt.err (!%p318_p2)
}
   0x9   :  { %s322_s21 = scalar_lea.vmem %s17_s13, 1024  ;;  %p327_p4 = scmp.lt.s32.totalorder %s17_s13, %s17_s13 }
   0xa   :  { %p323_p3 = scmp.ne.s32.totalorder %s17_s13, %s322_s21  ;;  %p328_p5 = scmp.lt.s32.totalorder %s322_s21, %s322_s21 }
   0xc   :  { %p329_p6 = por %p328_p5, %p327_p4 }
   0xe   :  { %p330_p7 = pnand %p329_p6, %p323_p3 }
  0x10   :  { %333 = shalt.err (!%p330_p7)
}
  0x11   :  { %s385_s22 = smov 128   ;;  %s386_s23 = smov 8  }
  0x12   :  { %22 = dma.hbm_to_vmem [thread:$0]  %s470_s0, 1024, %s17_s13, [#allocation4], %s385_s22, %s385_s22, %s386_s23  }
  0x13   :  { %s387_s26 = smov [#allocation6]   ;;  %s334_s30 = scalar_lea.hbm %s471_s1, 64 }
  0x14   :  { %s29_s27 = sshll.u32 %s387_s26, 4  ;;  %p335_p8 = scmp.ne.s32.totalorder %s471_s1, %s334_s30  ;;  %s30_s27 = int_to_ptr.vmem [resolvable:$true] %s29_s27 }
  0x15   :  { %p338_p9 = scmp.lt.u32.totalorder %s334_s30, %s471_s1 }
  0x17   :  { %p340_p10 = pnand %p338_p9, %p335_p8 }
  0x19   :  { %343 = shalt.err (!%p340_p10)
}
  0x1a   :  { %s344_s8 = scalar_lea.vmem %s30_s27, 64  ;;  %p349_p12 = scmp.lt.s32.totalorder %s30_s27, %s30_s27 }
  0x1b   :  { %p345_p11 = scmp.ne.s32.totalorder %s30_s27, %s344_s8  ;;  %p350_p13 = scmp.lt.s32.totalorder %s344_s8, %s344_s8 }
  0x1d   :  { %p351_p0 = por %p350_p13, %p349_p12 }
  0x1f   :  { %p352_p1 = pnand %p351_p0, %p345_p11 }
  0x21   :  { %355 = shalt.err (!%p352_p1)
}
  0x22   :  { %32 = dma.hbm_to_vmem [thread:$0]  %s471_s1, 64, %s30_s27, [#allocation7]  }
  0x23   :  { %378 = dma.done.wait [#allocation4], 1024  }
  0x24   :  { %379 = vsyncadd [#allocation4], 4294966272 }
  0x25   :  { %380 = dma.done.wait [#allocation7], 64  }
  0x26   :  { %381 = vsyncadd [#allocation7], 4294967232  ;;  %vm80_vm0 = vcmask 1043456   ;;  %v48_v0 = vld [vmem:[#allocation3] sm:$0xff]  ;;  %v50_v1 = vld [vmem:[#allocation3 + $0x10] sm:$0xff]  ;;  %vm45_vm1 = vcmask 31744   ;;  %v129_v42 = vlaneseq }
  0x27   :  { %v49_v2 = vld [vmem:[#allocation3 + $0x8] sm:$0xff]  ;;  %v64_v3 = vcombine.high %v48_v0, %v48_v0  ;;  %v81_v4 = vsel %vm80_vm0, %v48_v0, 0.0  ;;  %v66_v5 = vcombine.high %v50_v1, %v50_v1  ;;  %v91_v6 = vsel %vm80_vm0, %v50_v1, 0.0  ;;  %v51_v7 = vld [vmem:[#allocation3 + $0x18] sm:$0xff]  ;;  %v52_v8 = vld [vmem:[#allocation3 + $0x20] sm:$0xff]  ;;  %s390_s11 = smov [#allocation8]  }
  0x28   :  { %v65_v9 = vcombine.high %v49_v2, %v49_v2  ;;  %v86_v10 = vsel %vm80_vm0, %v49_v2, 0.0  ;;  %v67_v11 = vcombine.high %v51_v7, %v51_v7  ;;  %v53_v12 = vld [vmem:[#allocation3 + $0x28] sm:$0xff]  ;;  %v96_v15 = vsel %vm80_vm0, %v51_v7, 0.0  ;;  %v54_v21 = vld [vmem:[#allocation3 + $0x30] sm:$0xff]  ;;  %v55_v22 = vld [vmem:[#allocation3 + $0x38] sm:$0xff]  ;;  %s277_s12 = sshll.u32 %s390_s11, 4  ;;  %s278_s12 = int_to_ptr.vmem [resolvable:$true] %s277_s12 }
  0x29   :  { %v82_v13 = vsel %vm80_vm0, %v64_v3, 0.0  ;;  %v92_v14 = vsel %vm80_vm0, %v66_v5, 0.0  ;;  %v68_v16 = vcombine.high %v52_v8, %v52_v8  ;;  %v69_v23 = vcombine.high %v53_v12, %v53_v12  ;;  %v184_v41 = vld [vmem:[#allocation6] sm:$0xf]  ;;  %s356_s13 = scalar_lea.vmem %s278_s12, 128  ;;  %p361_p3 = scmp.lt.s32.totalorder %s278_s12, %s278_s12 }
  0x2a   :  { %v83_v17 = vadd.f32 %v82_v13, %v81_v4  ;;  %v93_v18 = vadd.f32 %v92_v14, %v91_v6  ;;  %v87_v19 = vsel %vm80_vm0, %v65_v9, 0.0  ;;  %v97_v20 = vsel %vm80_vm0, %v67_v11, 0.0  ;;  %v287_v9 = vld [vmem:[%s472_s2] ss:$0 sm:$0xff]  ;;  %p357_p2 = scmp.ne.s32.totalorder %s278_s12, %s356_s13  ;;  %p362_p4 = scmp.lt.s32.totalorder %s356_s13, %s356_s13 }
  0x2b   :  { %v88_v24 = vadd.f32 %v87_v19, %v86_v10  ;;  %v98_v25 = vadd.f32 %v97_v20, %v96_v15  ;;  %v101_v26 = vsel %vm80_vm0, %v52_v8, 0.0  ;;  %v102_v27 = vsel %vm80_vm0, %v68_v16, 0.0 }
  0x2c   :  { %84 = vadd.xlane.f32.xlu0 %v83_v17  ;;  %94 = vadd.xlane.f32.xlu1 %v93_v18  ;;  %v106_v28 = vsel %vm80_vm0, %v53_v12, 0.0  ;;  %v107_v29 = vsel %vm80_vm0, %v69_v23, 0.0  ;;  %v70_v30 = vcombine.high %v54_v21, %v54_v21  ;;  %v71_v31 = vcombine.high %v55_v22, %v55_v22  ;;  %p363_p5 = por %p362_p4, %p361_p3 }
  0x2d   :  { %v103_v32 = vadd.f32 %v102_v27, %v101_v26  ;;  %v108_v33 = vadd.f32 %v107_v29, %v106_v28  ;;  %v111_v34 = vsel %vm80_vm0, %v54_v21, 0.0  ;;  %v116_v36 = vsel %vm80_vm0, %v55_v22, 0.0 }
  0x2e   :  { %v112_v35 = vsel %vm80_vm0, %v70_v30, 0.0  ;;  %v117_v37 = vsel %vm80_vm0, %v71_v31, 0.0  ;;  %v388_v40 = vmov 0.0   ;;  %vm389_vm2 = vmmov 0   ;;  %p364_p6 = pnand %p363_p5, %p357_p2 }
  0x2f   :  { %v113_v38 = vadd.f32 %v112_v35, %v111_v34  ;;  %v118_v39 = vadd.f32 %v117_v37, %v116_v36  ;;  %292 = vmatprep.subr.mxu0 %v388_v40  ;;  %46 = vst.msk [vmem:[#allocation2] sm:$0xff] %vm45_vm1, %v388_v40  ;;  %294 = vmatprep.mubr.msk.f32.mxu0 %vm389_vm2, %v388_v40  ;;  %v130_v43 = vand.u32 127, %v129_v42  ;;  %v132_v44 = vshrl.u32 %v129_v42, 7 }
  0x30   :  { %89 = vadd.xlane.f32.xlu0 %v88_v24  ;;  %99 = vadd.xlane.f32.xlu1 %v98_v25  ;;  %vm163_vm3 = vcmask 1041409   ;;  %vm165_vm4 = vcmask 1042434   ;;  %vm167_vm5 = vcmask 1043459   ;;  %vm169_vm6 = vcmask 1044484  }
  0x31   :  { %293 = vmatpush3.msk.msra.mxu0 %vm80_vm0, %v184_v41  ;;  %v133_v47 = vsub.s32 %v130_v43, %v132_v44  ;;  %vm171_vm7 = vcmask 1045509   ;;  %vm173_vm8 = vcmask 1046534   ;;  %vm175_vm9 = vcmask 1047559  }
  0x34   :  { %104 = vadd.xlane.f32.xlu0 %v103_v32  ;;  %109 = vadd.xlane.f32.xlu1 %v108_v33 }
  0x36   :  { %v47_v3 = vld [vmem:[#allocation2] sm:$0xff] }
  0x38   :  { %114 = vadd.xlane.f32.xlu0 %v113_v38  ;;  %119 = vadd.xlane.f32.xlu1 %v118_v39 }
  0xb9   :  { %v85_v45 = vpop.xlane.xlu0 %84  ;;  %v95_v46 = vpop.xlane.xlu1 %94 }
  0xba   :  { %v134_v50 = vrot.slane %v85_v45, %v133_v47  ;;  %v142_v53 = vrot.slane %v95_v46, %v133_v47 }
  0xbd   :  { %v90_v48 = vpop.xlane.xlu0 %89  ;;  %v100_v49 = vpop.xlane.xlu1 %99 }
  0xbe   :  { %v138_v51 = vrot.slane %v90_v48, %v133_v47  ;;  %v146_v52 = vrot.slane %v100_v49, %v133_v47 }
  0xc0   :  { %v164_v54 = vsel %vm163_vm3, %v138_v51, %v134_v50 }
  0xc1   :  { %v166_v55 = vsel %vm165_vm4, %v142_v53, %v164_v54  ;;  %v105_v56 = vpop.xlane.xlu0 %104  ;;  %v110_v57 = vpop.xlane.xlu1 %109 }
  0xc2   :  { %v168_v58 = vsel %vm167_vm5, %v146_v52, %v166_v55  ;;  %v150_v59 = vrot.slane %v105_v56, %v133_v47  ;;  %v154_v60 = vrot.slane %v110_v57, %v133_v47 }
  0xc4   :  { %v170_v61 = vsel %vm169_vm6, %v150_v59, %v168_v58 }
  0xc5   :  { %v115_v62 = vpop.xlane.xlu0 %114  ;;  %v120_v63 = vpop.xlane.xlu1 %119  ;;  %v172_v2 = vsel %vm171_vm7, %v154_v60, %v170_v61 }
  0xc6   :  { %v158_v0 = vrot.slane %v115_v62, %v133_v47  ;;  %v162_v1 = vrot.slane %v120_v63, %v133_v47 }
  0xc8   :  { %v174_v4 = vsel %vm173_vm8, %v158_v0, %v172_v2 }
  0xc9   :  { %v176_v5 = vsel %vm175_vm9, %v162_v1, %v174_v4 }
  0xca   :  { %v178_v6 = vadd.f32 %v176_v5, %v47_v3 }
  0xcc   :  { %180 = vst.msk [vmem:[#allocation2] sm:$0xff] %vm45_vm1, %v178_v6 }
  0xd3   :  { %v185_v7 = vld [vmem:[#allocation2] sm:$0xff] }
  0xd4   :  { %v186_v8 = vmul.f32 0.00390625, %v185_v7 }
  0xd6   :  { %295 = vmatmul.mubr.msk.f32.vlgmr.msra.gmra.mrb[0].mxu0 %vm45_vm1, %v186_v8 }
 0x1a9   :  { %v266_v10 = vpop.f32.mrb[0].mxu0 }
 0x1aa   :  { %v267_v11 = vadd.f32 %v287_v9, %v266_v10  ;;  %v296_v12 = vpop.f32.mrb[1].mxu0 }
 0x1ac   :  { %270 = vst [vmem:[#allocation8] sm:$0xff] %v267_v11 }
 0x1ad   :  { %367 = shalt.err (!%p364_p6)
}
 0x1ae   :  { %s368_s16 = scalar_lea.hbm %s473_s3, 128 }
 0x1af   :  { %p369_p7 = scmp.ne.s32.totalorder %s473_s3, %s368_s16  ;;  %p372_p8 = scmp.lt.u32.totalorder %s368_s16, %s473_s3 }
 0x1b1   :  { %p374_p9 = pnand %p372_p8, %p369_p7 }
 0x1b3   :  { %377 = shalt.err (!%p374_p9)
}
 0x1b4   :  { %280 = dma.vmem_to_hbm [thread:$0]  %s278_s12, 128, %s473_s3, [#allocation5]  }
 0x1b5   :  { %382 = dma.done.wait [#allocation5], 128  }
 0x1b6   :  { %383 = vsyncadd [#allocation5], 4294967168 }
 0x1b7   :  { %284 = vsyncpa [#allocation4], 1 }
 0x1b8   :  { %285 = vsyncpa [#allocation7], 1 }
 0x1b9   :  { %286 = vsyncpa [#allocation5], 1 }

</bundles_post_ra>
